<compile_context>
chip_gen: v7x
topology: tpu7x:2x2x1
jax: 0.10.0
libtpu: 0.0.40
codegen_flags: <defaults>
</compile_context>

<pallas_src>
import jax
import jax.numpy as jnp
import numpy as np
from jax.experimental import pallas as pl
from jax.experimental.pallas import tpu as pltpu


# ---------------------------------------------------------------------------
# Pallas kernel: full st_gcn forward for ONE batch element per grid step.
# All intermediates are (Cout, T*V) values that live in vregs; no scratch.
# ---------------------------------------------------------------------------
def _st_gcn_kernel(x_ref,     # (1, Cin, T*V)    input block (lane-dense)
                   A_ref,     # (T*V, T*V)       block-diagonal adjacency
                   w1_ref,    # (Cout, Cin)      gcn 1x1 conv weight
                   wt_ref,    # (kt, Cout, Cout) temporal conv weight
                   S_ref,     # (kt, T*V, T*V)   temporal shift matrices
                   vec_ref,   # (Cout, 8)        packed per-channel constants
                   a_ref,     # (2,) SMEM        PReLU slopes [a1, a2]
                   o_ref):    # (1, Cout, T*V)   output block (lane-dense)
    kt = wt_ref.shape[0]

    x = x_ref[0]                                   # (Cin, T*V), read once
    vec = vec_ref[...]                             # (Cout, 8)
    b1 = vec[:, 0:1]
    s1 = vec[:, 1:2]
    h1 = vec[:, 2:3]
    bt = vec[:, 3:4]
    s2 = vec[:, 4:5]
    h2 = vec[:, 5:6]
    a1 = a_ref[0]
    a2 = a_ref[1]

    # ---- GCN: 1x1 conv over channels (single lane-dense MXU matmul) -------
    y = jnp.dot(w1_ref[...], x, preferred_element_type=jnp.float32) + b1
    # graph mixing: one matmul against the block-diagonal adjacency
    z = jnp.dot(y, A_ref[...], preferred_element_type=jnp.float32)

    # ---- BN1 (folded, eval mode) + PReLU(a1) -------------------------------
    z = z * s1 + h1
    z = jnp.where(z > 0, z, a1 * z)

    # ---- TCN: temporal "same" conv via shift-matrix matmuls ---------------
    acc = jnp.zeros_like(z)
    for dt in range(kt):                           # kt is small & static
        zs = jnp.dot(z, S_ref[dt], preferred_element_type=jnp.float32)
        acc = acc + jnp.dot(wt_ref[dt], zs,
                            preferred_element_type=jnp.float32)

    # conv bias + BN2 (folded) + identity residual + final PReLU(a2)
    out = (acc + bt) * s2 + h2 + x
    out = jnp.where(out > 0, out, a2 * out)

    o_ref[0] = out.astype(o_ref.dtype)             # single lane-dense store


# ---------------------------------------------------------------------------
# Wrapper: parameter folding, constant-matrix construction, pallas_call.
# ---------------------------------------------------------------------------
def st_gcn_forward(x, A, params):
    N, C_in, T, V = x.shape
    C_out = params["w1"].shape[0]
    kt = params["wt"].shape[0]
    assert C_in == C_out, "identity residual branch requires in == out channels"
    assert A.shape[0] == T, "einsum 'nctv,tvw' requires A.shape[0] == T"
    assert kt % 2 == 1, "temporal kernel must be odd (PyTorch same-padding)"
    pad = (kt - 1) // 2
    eps = 1e-5
    TV = T * V
    f32 = jnp.float32

    # lane-dense view of the input: (N, Cin, T*V)
    x_flat = x.reshape(N, C_in, TV).astype(f32)

    # Block-diagonal adjacency: A_bd[(s,v),(t,w)] = delta(s,t) * A[t,v,w]
    A_bd = jnp.einsum("svw,st->svtw", A.astype(f32), jnp.eye(T, dtype=f32))
    A_bd = A_bd.reshape(TV, TV)

    # Temporal shift matrices: (z @ S[dt])[:, t*V+w] = z[:, (t+dt-pad)*V+w]
    # with zero fill outside [0, T)  (i.e. the zero-padded "same" conv taps).
    eye_V = jnp.eye(V, dtype=f32)
    S = jnp.stack([
        jnp.einsum("st,vw->svtw",
                   jnp.eye(T, k=pad - dt, dtype=f32), eye_V).reshape(TV, TV)
        for dt in range(kt)
    ])

    # fold eval-mode BatchNorm into per-channel scale/shift
    s1 = params["g1"] / jnp.sqrt(params["v1"] + eps)
    h1 = params["be1"] - params["m1"] * s1
    s2 = params["g2"] / jnp.sqrt(params["v2"] + eps)
    h2 = params["be2"] - params["m2"] * s2

    # pack the six per-channel vectors into one (Cout, 8) input
    vec = jnp.zeros((C_out, 8), f32)
    vec = vec.at[:, :6].set(jnp.stack(
        [params["b1"].astype(f32), s1.astype(f32), h1.astype(f32),
         params["bt"].astype(f32), s2.astype(f32), h2.astype(f32)], axis=1))

    prelu_a = jnp.array([params["a1"], params["a2"]], dtype=f32)

    const = lambda shape: pl.BlockSpec(shape, lambda n: tuple(0 for _ in shape))

    out_flat = pl.pallas_call(
        _st_gcn_kernel,
        out_shape=jax.ShapeDtypeStruct((N, C_out, TV), f32),
        grid=(N,),
        in_specs=[
            pl.BlockSpec((1, C_in, TV), lambda n: (n, 0, 0)),     # x (flat)
            const((TV, TV)),                                      # A_bd
            const((C_out, C_in)),                                 # w1
            const((kt, C_out, C_out)),                            # wt
            const((kt, TV, TV)),                                  # S
            const((C_out, 8)),                                    # packed vecs
            pl.BlockSpec(memory_space=pltpu.MemorySpace.SMEM),    # prelu a
        ],
        out_specs=pl.BlockSpec((1, C_out, TV), lambda n: (n, 0, 0)),
        compiler_params=pltpu.CompilerParams(
            dimension_semantics=("parallel",)),
    )(
        x_flat, A_bd,
        params["w1"].astype(f32),
        params["wt"].astype(f32),
        S, vec, prelu_a,
    )
    return out_flat.reshape(N, C_out, T, V), A


# ---------------------------------------------------------------------------
# Pure-JAX reference (mirrors the PyTorch module, eval-mode BN / dropout).
# ---------------------------------------------------------------------------
def st_gcn_reference(x, A, p):
    eps = 1e-5
    T = x.shape[2]
    bc = lambda v: v[None, :, None, None]

    # gcn: 1x1 conv + einsum('nctv,tvw->nctw')
    y = jnp.einsum("oc,nctv->notv", p["w1"], x) + bc(p["b1"])
    z = jnp.einsum("nctv,tvw->nctw", y, A)

    # tcn: BN1 -> PReLU(a1) -> temporal conv -> BN2 -> Dropout(0)
    z = (z - bc(p["m1"])) / jnp.sqrt(bc(p["v1"]) + eps) * bc(p["g1"]) + bc(p["be1"])
    z = jnp.where(z > 0, z, p["a1"] * z)

    kt = p["wt"].shape[0]
    pad = (kt - 1) // 2
    zp = jnp.pad(z, ((0, 0), (0, 0), (pad, pad), (0, 0)))
    out = bc(p["bt"])
    for dt in range(kt):
        out = out + jnp.einsum("oc,nctv->notv", p["wt"][dt], zp[:, :, dt:dt + T, :])
    out = (out - bc(p["m2"])) / jnp.sqrt(bc(p["v2"]) + eps) * bc(p["g2"]) + bc(p["be2"])

    out = out + x                                   # identity residual
    out = jnp.where(out > 0, out, p["a2"] * out)    # final PReLU
    return out


# ---------------------------------------------------------------------------
if __name__ == "__main__":
    # x (N, C, T, V), A (K=T, V, V); kernel_size = (3, T): temporal kernel 3,
    # spatial kernel K = T.  T*V = 128 => exactly one lane-dense slab.
    N, C, T, V, KT = 2, 4, 8, 16, 3

    key = jax.random.PRNGKey(0)
    ks = jax.random.split(key, 16)

    x = jax.random.normal(ks[0], (N, C, T, V), dtype=jnp.float32)
    A = jax.random.normal(ks[1], (T, V, V), dtype=jnp.float32) * 0.3

    params = dict(
        # ConvTemporalGraphical 1x1 conv
        w1=jax.random.normal(ks[2], (C, C), dtype=jnp.float32) * 0.3,
        b1=jax.random.normal(ks[3], (C,), dtype=jnp.float32) * 0.1,
        # temporal conv (kt, 1), stored as (kt, Cout, Cin)
        wt=jax.random.normal(ks[4], (KT, C, C), dtype=jnp.float32) * 0.3,
        bt=jax.random.normal(ks[5], (C,), dtype=jnp.float32) * 0.1,
        # BatchNorm2d #1 (gamma, beta, running mean/var)
        g1=1.0 + 0.1 * jax.random.normal(ks[6], (C,), dtype=jnp.float32),
        be1=0.1 * jax.random.normal(ks[7], (C,), dtype=jnp.float32),
        m1=0.1 * jax.random.normal(ks[8], (C,), dtype=jnp.float32),
        v1=jax.random.uniform(ks[9], (C,), minval=0.5, maxval=1.5,
                              dtype=jnp.float32),
        # BatchNorm2d #2
        g2=1.0 + 0.1 * jax.random.normal(ks[10], (C,), dtype=jnp.float32),
        be2=0.1 * jax.random.normal(ks[11], (C,), dtype=jnp.float32),
        m2=0.1 * jax.random.normal(ks[12], (C,), dtype=jnp.float32),
        v2=jax.random.uniform(ks[13], (C,), minval=0.5, maxval=1.5,
                              dtype=jnp.float32),
        # PReLU slopes (nn.PReLU default scalar 0.25; second one perturbed)
        a1=jnp.float32(0.25),
        a2=jnp.float32(0.1),
    )

    out, A_out = st_gcn_forward(x, A, params)
    out = jax.block_until_ready(out)

    ref = st_gcn_reference(x, A, params)
    np.testing.assert_allclose(np.asarray(out), np.asarray(ref),
                               rtol=1e-4, atol=1e-4)
    assert out.shape == (N, C, T, V)
    assert A_out.shape == A.shape

    print("KERNEL_OK")
</pallas_src>

<mosaic_0001>
module attributes {stable_mosaic.version = 11 : i64} {
  func.func @_st_gcn_kernel(%arg0: i32, %arg1: memref<1x4x128xf32, #tpu.memory_space<vmem>>, %arg2: memref<128x128xf32, #tpu.memory_space<vmem>>, %arg3: memref<4x4xf32, #tpu.memory_space<vmem>>, %arg4: memref<3x4x4xf32, #tpu.memory_space<vmem>>, %arg5: memref<3x128x128xf32, #tpu.memory_space<vmem>>, %arg6: memref<4x8xf32, #tpu.memory_space<vmem>>, %arg7: memref<2xf32, #tpu.memory_space<smem>>, %arg8: memref<1x4x128xf32, #tpu.memory_space<vmem>>) attributes {dimension_semantics = [#tpu.dimension_semantics<parallel>], iteration_bounds = array<i64: 2>, scalar_prefetch = 0 : i64, scratch_operands = 0 : i64, tpu.core_type = #tpu.core_type<tc>, window_params = [{transform_indices = @transform_0, window_bounds = array<i64: 1, 4, 128>}, {pipeline_mode = #tpu.pipeline_mode<synchronous>, transform_indices = @transform_1, window_bounds = array<i64: 128, 128>}, {pipeline_mode = #tpu.pipeline_mode<synchronous>, transform_indices = @transform_2, window_bounds = array<i64: 4, 4>}, {pipeline_mode = #tpu.pipeline_mode<synchronous>, transform_indices = @transform_3, window_bounds = array<i64: 3, 4, 4>}, {pipeline_mode = #tpu.pipeline_mode<synchronous>, transform_indices = @transform_4, window_bounds = array<i64: 3, 128, 128>}, {pipeline_mode = #tpu.pipeline_mode<synchronous>, transform_indices = @transform_5, window_bounds = array<i64: 4, 8>}, {transform_indices = @transform_6, window_bounds = array<i64: 2>}, {transform_indices = @transform_7, window_bounds = array<i64: 1, 4, 128>}]} {
    %c0 = arith.constant 0 : index
    %c0_0 = arith.constant 0 : index
    %c0_1 = arith.constant 0 : index
    %0 = vector.load %arg1[%c0, %c0_0, %c0_1] : memref<1x4x128xf32, #tpu.memory_space<vmem>>, vector<1x4x128xf32>
    %1 = vector.shape_cast %0 : vector<1x4x128xf32> to vector<4x128xf32>
    %c0_2 = arith.constant 0 : index
    %c0_3 = arith.constant 0 : index
    %2 = vector.load %arg6[%c0_2, %c0_3] : memref<4x8xf32, #tpu.memory_space<vmem>>, vector<4x8xf32>
    %3 = vector.extract_strided_slice %2 {offsets = [0, 0], sizes = [4, 1], strides = [1, 1]} : vector<4x8xf32> to vector<4x1xf32>
    %4 = vector.extract_strided_slice %2 {offsets = [0, 1], sizes = [4, 1], strides = [1, 1]} : vector<4x8xf32> to vector<4x1xf32>
    %5 = vector.extract_strided_slice %2 {offsets = [0, 2], sizes = [4, 1], strides = [1, 1]} : vector<4x8xf32> to vector<4x1xf32>
    %6 = vector.extract_strided_slice %2 {offsets = [0, 3], sizes = [4, 1], strides = [1, 1]} : vector<4x8xf32> to vector<4x1xf32>
    %7 = vector.extract_strided_slice %2 {offsets = [0, 4], sizes = [4, 1], strides = [1, 1]} : vector<4x8xf32> to vector<4x1xf32>
    %8 = vector.extract_strided_slice %2 {offsets = [0, 5], sizes = [4, 1], strides = [1, 1]} : vector<4x8xf32> to vector<4x1xf32>
    %c0_4 = arith.constant 0 : index
    %9 = memref.load %arg7[%c0_4] : memref<2xf32, #tpu.memory_space<smem>>
    %c1 = arith.constant 1 : index
    %10 = memref.load %arg7[%c1] : memref<2xf32, #tpu.memory_space<smem>>
    %c0_5 = arith.constant 0 : index
    %c0_6 = arith.constant 0 : index
    %11 = vector.load %arg3[%c0_5, %c0_6] : memref<4x4xf32, #tpu.memory_space<vmem>>, vector<4x4xf32>
    %cst = arith.constant dense<0.000000e+00> : vector<4x128xf32>
    %12 = tpu.matmul %11, %1, %cst {dimension_numbers = #tpu.dot_dimension_numbers<[1], [0], [0], [1], [0, 0, 1, 1], [], []>} : vector<4x4xf32>, vector<4x128xf32>, vector<4x128xf32> -> vector<4x128xf32>
    %13 = vector.broadcast %3 : vector<4x1xf32> to vector<4x128xf32>
    %14 = arith.addf %12, %13 : vector<4x128xf32>
    %c0_7 = arith.constant 0 : index
    %c0_8 = arith.constant 0 : index
    %15 = vector.load %arg2[%c0_7, %c0_8] : memref<128x128xf32, #tpu.memory_space<vmem>>, vector<128x128xf32>
    %cst_9 = arith.constant dense<0.000000e+00> : vector<4x128xf32>
    %16 = tpu.matmul %14, %15, %cst_9 {dimension_numbers = #tpu.dot_dimension_numbers<[1], [0], [0], [1], [0, 0, 1, 1], [], []>} : vector<4x128xf32>, vector<128x128xf32>, vector<4x128xf32> -> vector<4x128xf32>
    %17 = vector.broadcast %4 : vector<4x1xf32> to vector<4x128xf32>
    %18 = arith.mulf %16, %17 : vector<4x128xf32>
    %19 = vector.broadcast %5 : vector<4x1xf32> to vector<4x128xf32>
    %20 = arith.addf %18, %19 : vector<4x128xf32>
    %cst_10 = arith.constant 0.000000e+00 : f32
    %21 = vector.broadcast %cst_10 : f32 to vector<4x128xf32>
    %22 = arith.cmpf ogt, %20, %21 : vector<4x128xf32>
    %23 = vector.broadcast %9 : f32 to vector<4x128xf32>
    %24 = arith.mulf %23, %20 : vector<4x128xf32>
    %25 = arith.select %22, %20, %24 : vector<4x128xi1>, vector<4x128xf32>
    %cst_11 = arith.constant 0.000000e+00 : f32
    %26 = vector.broadcast %cst_11 : f32 to vector<4x128xf32>
    %c0_12 = arith.constant 0 : index
    %c0_13 = arith.constant 0 : index
    %c0_14 = arith.constant 0 : index
    %27 = vector.load %arg5[%c0_12, %c0_13, %c0_14] : memref<3x128x128xf32, #tpu.memory_space<vmem>>, vector<1x128x128xf32>
    %28 = vector.shape_cast %27 : vector<1x128x128xf32> to vector<128x128xf32>
    %cst_15 = arith.constant dense<0.000000e+00> : vector<4x128xf32>
    %29 = tpu.matmul %25, %28, %cst_15 {dimension_numbers = #tpu.dot_dimension_numbers<[1], [0], [0], [1], [0, 0, 1, 1], [], []>} : vector<4x128xf32>, vector<128x128xf32>, vector<4x128xf32> -> vector<4x128xf32>
    %c0_16 = arith.constant 0 : index
    %c0_17 = arith.constant 0 : index
    %c0_18 = arith.constant 0 : index
    %30 = vector.load %arg4[%c0_16, %c0_17, %c0_18] : memref<3x4x4xf32, #tpu.memory_space<vmem>>, vector<1x4x4xf32>
    %31 = vector.shape_cast %30 : vector<1x4x4xf32> to vector<4x4xf32>
    %cst_19 = arith.constant dense<0.000000e+00> : vector<4x128xf32>
    %32 = tpu.matmul %31, %29, %cst_19 {dimension_numbers = #tpu.dot_dimension_numbers<[1], [0], [0], [1], [0, 0, 1, 1], [], []>} : vector<4x4xf32>, vector<4x128xf32>, vector<4x128xf32> -> vector<4x128xf32>
    %33 = arith.addf %26, %32 : vector<4x128xf32>
    %c1_20 = arith.constant 1 : index
    %c0_21 = arith.constant 0 : index
    %c0_22 = arith.constant 0 : index
    %34 = vector.load %arg5[%c1_20, %c0_21, %c0_22] : memref<3x128x128xf32, #tpu.memory_space<vmem>>, vector<1x128x128xf32>
    %35 = vector.shape_cast %34 : vector<1x128x128xf32> to vector<128x128xf32>
    %cst_23 = arith.constant dense<0.000000e+00> : vector<4x128xf32>
    %36 = tpu.matmul %25, %35, %cst_23 {dimension_numbers = #tpu.dot_dimension_numbers<[1], [0], [0], [1], [0, 0, 1, 1], [], []>} : vector<4x128xf32>, vector<128x128xf32>, vector<4x128xf32> -> vector<4x128xf32>
    %c1_24 = arith.constant 1 : index
    %c0_25 = arith.constant 0 : index
    %c0_26 = arith.constant 0 : index
    %37 = vector.load %arg4[%c1_24, %c0_25, %c0_26] : memref<3x4x4xf32, #tpu.memory_space<vmem>>, vector<1x4x4xf32>
    %38 = vector.shape_cast %37 : vector<1x4x4xf32> to vector<4x4xf32>
    %cst_27 = arith.constant dense<0.000000e+00> : vector<4x128xf32>
    %39 = tpu.matmul %38, %36, %cst_27 {dimension_numbers = #tpu.dot_dimension_numbers<[1], [0], [0], [1], [0, 0, 1, 1], [], []>} : vector<4x4xf32>, vector<4x128xf32>, vector<4x128xf32> -> vector<4x128xf32>
    %40 = arith.addf %33, %39 : vector<4x128xf32>
    %c2 = arith.constant 2 : index
    %c0_28 = arith.constant 0 : index
    %c0_29 = arith.constant 0 : index
    %41 = vector.load %arg5[%c2, %c0_28, %c0_29] : memref<3x128x128xf32, #tpu.memory_space<vmem>>, vector<1x128x128xf32>
    %42 = vector.shape_cast %41 : vector<1x128x128xf32> to vector<128x128xf32>
    %cst_30 = arith.constant dense<0.000000e+00> : vector<4x128xf32>
    %43 = tpu.matmul %25, %42, %cst_30 {dimension_numbers = #tpu.dot_dimension_numbers<[1], [0], [0], [1], [0, 0, 1, 1], [], []>} : vector<4x128xf32>, vector<128x128xf32>, vector<4x128xf32> -> vector<4x128xf32>
    %c2_31 = arith.constant 2 : index
    %c0_32 = arith.constant 0 : index
    %c0_33 = arith.constant 0 : index
    %44 = vector.load %arg4[%c2_31, %c0_32, %c0_33] : memref<3x4x4xf32, #tpu.memory_space<vmem>>, vector<1x4x4xf32>
    %45 = vector.shape_cast %44 : vector<1x4x4xf32> to vector<4x4xf32>
    %cst_34 = arith.constant dense<0.000000e+00> : vector<4x128xf32>
    %46 = tpu.matmul %45, %43, %cst_34 {dimension_numbers = #tpu.dot_dimension_numbers<[1], [0], [0], [1], [0, 0, 1, 1], [], []>} : vector<4x4xf32>, vector<4x128xf32>, vector<4x128xf32> -> vector<4x128xf32>
    %47 = arith.addf %40, %46 : vector<4x128xf32>
    %48 = vector.broadcast %6 : vector<4x1xf32> to vector<4x128xf32>
    %49 = arith.addf %47, %48 : vector<4x128xf32>
    %50 = vector.broadcast %7 : vector<4x1xf32> to vector<4x128xf32>
    %51 = arith.mulf %49, %50 : vector<4x128xf32>
    %52 = vector.broadcast %8 : vector<4x1xf32> to vector<4x128xf32>
    %53 = arith.addf %51, %52 : vector<4x128xf32>
    %54 = arith.addf %53, %1 : vector<4x128xf32>
    %cst_35 = arith.constant 0.000000e+00 : f32
    %55 = vector.broadcast %cst_35 : f32 to vector<4x128xf32>
    %56 = arith.cmpf ogt, %54, %55 : vector<4x128xf32>
    %57 = vector.broadcast %10 : f32 to vector<4x128xf32>
    %58 = arith.mulf %57, %54 : vector<4x128xf32>
    %59 = arith.select %56, %54, %58 : vector<4x128xi1>, vector<4x128xf32>
    %c0_36 = arith.constant 0 : index
    %c0_37 = arith.constant 0 : index
    %c0_38 = arith.constant 0 : index
    %60 = vector.load %arg8[%c0_36, %c0_37, %c0_38] : memref<1x4x128xf32, #tpu.memory_space<vmem>>, vector<1x4x128xf32>
    %61 = vector.shape_cast %60 : vector<1x4x128xf32> to vector<4x128xf32>
    %62 = vector.shape_cast %59 : vector<4x128xf32> to vector<1x4x128xf32>
    tpu.vector_store %arg8[%c0_36, %c0_37, %c0_38], %62 {strides = array<i32>} : memref<1x4x128xf32, #tpu.memory_space<vmem>>, vector<1x4x128xf32>,
    return
  }
  func.func @transform_0(%arg0: i32) -> (i32, i32, i32) {
    %c0_i32 = arith.constant 0 : i32
    %c0_i32_0 = arith.constant 0 : i32
    %c0_i32_1 = arith.constant 0 : i32
    return %arg0, %c0_i32, %c0_i32_0 : i32, i32, i32
  }
  func.func @transform_1(%arg0: i32) -> (i32, i32) {
    %c0_i32 = arith.constant 0 : i32
    %c0_i32_0 = arith.constant 0 : i32
    %c0_i32_1 = arith.constant 0 : i32
    return %c0_i32, %c0_i32_0 : i32, i32
  }
  func.func @transform_2(%arg0: i32) -> (i32, i32) {
    %c0_i32 = arith.constant 0 : i32
    %c0_i32_0 = arith.constant 0 : i32
    %c0_i32_1 = arith.constant 0 : i32
    return %c0_i32, %c0_i32_0 : i32, i32
  }
  func.func @transform_3(%arg0: i32) -> (i32, i32, i32) {
    %c0_i32 = arith.constant 0 : i32
    %c0_i32_0 = arith.constant 0 : i32
    %c0_i32_1 = arith.constant 0 : i32
    %c0_i32_2 = arith.constant 0 : i32
    return %c0_i32, %c0_i32_0, %c0_i32_1 : i32, i32, i32
  }
  func.func @transform_4(%arg0: i32) -> (i32, i32, i32) {
    %c0_i32 = arith.constant 0 : i32
    %c0_i32_0 = arith.constant 0 : i32
    %c0_i32_1 = arith.constant 0 : i32
    %c0_i32_2 = arith.constant 0 : i32
    return %c0_i32, %c0_i32_0, %c0_i32_1 : i32, i32, i32
  }
  func.func @transform_5(%arg0: i32) -> (i32, i32) {
    %c0_i32 = arith.constant 0 : i32
    %c0_i32_0 = arith.constant 0 : i32
    %c0_i32_1 = arith.constant 0 : i32
    return %c0_i32, %c0_i32_0 : i32, i32
  }
  func.func @transform_6(%arg0: i32) -> i32 {
    %c0_i32 = arith.constant 0 : i32
    %c0_i32_0 = arith.constant 0 : i32
    return %c0_i32 : i32
  }
  func.func @transform_7(%arg0: i32) -> (i32, i32, i32) {
    %c0_i32 = arith.constant 0 : i32
    %c0_i32_0 = arith.constant 0 : i32
    %c0_i32_1 = arith.constant 0 : i32
    return %arg0, %c0_i32, %c0_i32_0 : i32, i32, i32
  }
}

</mosaic_0001>

<bundles_post_ra>
// kernel: tpu_custom_call.1
= control target key start
LH: loop header
LB: loop body
LE: loop exit
PB: predicated region body
PF: predicated region fallthrough
CT: control target
= control target key end

     0   :  { %s2272_s0 = inlined_call_operand.hbm [shape: f32[2,4,128], index: 0, kind: input, shape index: {}]   ;;  %s2273_s1 = inlined_call_operand.hbm [shape: f32[128,128], index: 1, kind: input, shape index: {}]   ;;  %s2274_s2 = inlined_call_operand.vmem [shape: f32[4,4], index: 2, kind: input, shape index: {}]   ;;  %s2275_s3 = inlined_call_operand.hbm [shape: f32[3,4,4], index: 3, kind: input, shape index: {}]   ;;  %s2276_s4 = inlined_call_operand.hbm [shape: f32[3,128,128], index: 4, kind: input, shape index: {}]   ;;  %s2277_s5 = inlined_call_operand.vmem [shape: f32[4,8], index: 5, kind: input, shape index: {}]   ;;  %s2278_s6 = inlined_call_operand.vmem [shape: f32[2], index: 6, kind: input, shape index: {}]   ;;  %s2279_s7 = inlined_call_operand.hbm [shape: f32[2,4,128], index: 7, kind: output, shape index: {}]  }
   0x1   :  { %2285 = sst [smem:[#allocation18_spill]] %s2273_s1 }
   0x2   :  { %12 = vsyncpa [#allocation3], 0 }
   0x3   :  { %14 = vsyncpa [#allocation3 + $0x1], 0 }
   0x4   :  { %15 = vsyncpa [#allocation7], 0 }
   0x5   :  { %16 = vsyncpa [#allocation10], 0 }
   0x6   :  { %17 = vsyncpa [#allocation5], 0 }
   0x7   :  { %18 = vsyncpa [#allocation4], 0 }
   0x8   :  { %20 = vsyncpa [#allocation4 + $0x1], 0  ;;  %s1915_s24 = smov 0   ;;  %s1917_s25 = smov 0  }
   0x9   :  { %s1919_s26 = smov 0   ;;  %s1921_s27 = smov 0  }
   0xa LB: > { %s1856_s28 = smov [#allocation6]   ;;  %s1936_s30 = sadd.s32 4294967295, %s1854_s27   ;;  %s1854_s27 = sphi %s1921_s27, %s2311_s27   ;;  %s1850_s26 = sphi %s1919_s26, %s2310_s26   ;;  %s1846_s25 = sphi %s1917_s25, %s2309_s25   ;;  %s1842_s24 = sphi %s1915_s24, %s2308_s24  }
   0xb   : > { %s221_s29 = sshll.u32 %s1856_s28, 4  ;;  %p1181_p0 = scmp.ge.s32.totalorder %s1854_s27, 1  ;;  %s1941_s29 = int_to_ptr.vmem [resolvable:$true] %s221_s29 }
   0xc   : > { %p2282_p1 = scmp.eq.s32.totalorder %s1936_s30, 0  ;;  %p209_p2 = scmp.lt.s32.totalorder %s1854_s27, 3 }
   0xd   : > { %s1857_s9 = smov [#allocation8]   ;;  %s1858_s12 = smov [#allocation9]  }
   0xe   : > { %p1943_p3 = pnand %p1181_p0, %p209_p2  ;;  %s237_s10 = sshll.u32 %s1857_s9, 4  ;;  %s1956_s10 = int_to_ptr.vmem [resolvable:$true] %s237_s10 }
   0xf   : > { %s1958_s13 = sshll.u32 %s1858_s12, 4  ;;  %s2288_s1 = sld [smem:[#allocation18_spill]]  ;;  %s251_s13 = int_to_ptr.vmem [resolvable:$true] %s1958_s13 }
  0x10   : > { %s2286_s8 = scalar_select %p1943_p3, 1, 0 }
  0x11   : > { %p1561_p5 = pneg %p1943_p3 }
  0x13   : > { %p1952_p6 = pnand %p1561_p5, %p2282_p1 }
  0x15   : > { %s1647_s16 = scalar_lea.hbm %s2288_s1, 2048  ;;  %p1968_p8 = pneg %p1952_p6 }
  0x16   : > { %p1648_p7 = scmp.ne.s32.totalorder %s2288_s1, %s1647_s16  ;;  %p1654_p11 = scmp.lt.u32.totalorder %s1647_s16, %s2288_s1 }
  0x18   : > { %p1650_p9 = pnand %p1968_p8, %p1648_p7 }
  0x1a   : > { %p1651_p10 = pneg %p1650_p9 }
  0x1c   : > { %p1656_p12 = pnand %p1654_p11, %p1651_p10 }
  0x1e   : > { %1659 = shalt.err (!%p1656_p12)
}
  0x1f   : > { %s1660_s22 = scalar_lea.vmem %s1941_s29, 2048  ;;  %p1668_p5 = scmp.lt.s32.totalorder %s1941_s29, %s1941_s29 }
  0x20   : > { %p1661_p13 = scmp.ne.s32.totalorder %s1941_s29, %s1660_s22  ;;  %p1669_p4 = scmp.lt.s32.totalorder %s1660_s22, %s1660_s22 }
  0x22   : > { %p1663_p0 = pnand %p1661_p13, %p1968_p8  ;;  %p1670_p7 = por %p1669_p4, %p1668_p5 }
  0x24   : > { %p1664_p2 = pneg %p1663_p0 }
  0x26   : > { %p1671_p9 = pnand %p1670_p7, %p1664_p2 }
  0x28   : > { %1674 = shalt.err (!%p1671_p9)
}
  0x29   : > { %s2280_s23 = smov 128   ;;  %s2281_s28 = smov 8  }
  0x2a   : > { %1564 = dma.hbm_to_vmem [thread:$0]  (!%p1952_p6), %s2288_s1, 2048, %s1941_s29, [#allocation7], %s2280_s23, %s2280_s23, %s2281_s28  }
  0x2b   : > { %s1675_s16 = scalar_lea.hbm %s2275_s3, 192 }
  0x2c   : > { %p1676_p4 = scmp.ne.s32.totalorder %s2275_s3, %s1675_s16  ;;  %p1682_p12 = scmp.lt.u32.totalorder %s1675_s16, %s2275_s3 }
  0x2e   : > { %p1678_p10 = pnand %p1676_p4, %p1968_p8 }
  0x30   : > { %p1679_p11 = pneg %p1678_p10 }
  0x32   : > { %p1684_p13 = pnand %p1682_p12, %p1679_p11 }
  0x34   : > { %1687 = shalt.err (!%p1684_p13)
}
  0x35   : > { %s1688_s29 = scalar_lea.vmem %s1956_s10, 192  ;;  %p1696_p7 = scmp.lt.s32.totalorder %s1956_s10, %s1956_s10 }
  0x36   : > { %p1689_p0 = scmp.ne.s32.totalorder %s1956_s10, %s1688_s29  ;;  %p1697_p9 = scmp.lt.s32.totalorder %s1688_s29, %s1688_s29 }
  0x38   : > { %p1691_p2 = pnand %p1689_p0, %p1968_p8  ;;  %p1698_p4 = por %p1697_p9, %p1696_p7 }
  0x3a   : > { %p1692_p5 = pneg %p1691_p2 }
  0x3c   : > { %p1699_p10 = pnand %p1698_p4, %p1692_p5 }
  0x3e   : > { %1702 = shalt.err (!%p1699_p10)
}
  0x3f   : > { %s1861_s22 = smov 64   ;;  %s1862_s9 = smov 4  }
  0x40   : > { %1567 = dma.hbm_to_vmem [thread:$0]  (!%p1952_p6), %s2275_s3, 192, %s1956_s10, [#allocation7], %s1861_s22, %s1861_s22, %s1862_s9  }
  0x41   : > { %s267_s17 = sshll.u32 %s2278_s6, 4  ;;  %s1703_s21 = scalar_lea.hbm %s2276_s4, 6144  ;;  %s268_s17 = int_to_ptr.vmem [resolvable:$true] %s267_s17 }
  0x42   : > { %p1704_p11 = scmp.ne.s32.totalorder %s2276_s4, %s1703_s21  ;;  %p1710_p0 = scmp.lt.u32.totalorder %s1703_s21, %s2276_s4 }
  0x44   : > { %p1706_p12 = pnand %p1704_p11, %p1968_p8 }
  0x46   : > { %p1707_p13 = pneg %p1706_p12 }
  0x48   : > { %p1712_p2 = pnand %p1710_p0, %p1707_p13 }
  0x4a   : > { %1715 = shalt.err (!%p1712_p2)
}
  0x4b   : > { %s1716_s10 = scalar_lea.vmem %s251_s13, 6144  ;;  %p1724_p4 = scmp.lt.s32.totalorder %s251_s13, %s251_s13 }
  0x4c   : > { %p1717_p5 = scmp.ne.s32.totalorder %s251_s13, %s1716_s10  ;;  %p1725_p10 = scmp.lt.s32.totalorder %s1716_s10, %s1716_s10 }
  0x4e   : > { %p1719_p7 = pnand %p1717_p5, %p1968_p8  ;;  %p1726_p1 = por %p1725_p10, %p1724_p4 }
  0x50   : > { %p1720_p9 = pneg %p1719_p7 }
  0x52   : > { %p1727_p3 = pnand %p1726_p1, %p1720_p9 }
  0x54   : > { %1730 = shalt.err (!%p1727_p3)
}
  0x55   : > { %s2290_s23 = smov 8   ;;  %s2291_s22 = smov 128  }
  0x56   : > { %1570 = dma.hbm_to_vmem [thread:$0]  (!%p1952_p6), %s2276_s4, 6144, %s251_s13, [#allocation10], %s2291_s22, %s2291_s22, %s2290_s23  }
  0x57   : > { %s1731_s9 = scalar_lea.vmem %s268_s17, 16  ;;  %p1739_p0 = scmp.lt.s32.totalorder %s268_s17, %s268_s17 }
  0x58   : > { %p1732_p11 = scmp.ne.s32.totalorder %s268_s17, %s1731_s9  ;;  %p1740_p2 = scmp.lt.s32.totalorder %s1731_s9, %s1731_s9 }
  0x5a   : > { %p1734_p12 = pnand %p1732_p11, %p1968_p8  ;;  %p1741_p1 = por %p1740_p2, %p1739_p0 }
  0x5c   : > { %p1735_p13 = pneg %p1734_p12 }
  0x5e   : > { %p1742_p3 = pnand %p1741_p1, %p1735_p13 }
  0x60   : > { %1745 = shalt.err (!%p1742_p3)
}
  0x61   : > { %s1863_s12 = smov [#allocation11]   ;;  %s1180_s13 = sadd.s32 4294967294, %s1854_s27  }
  0x62   : > { %1573 = dma.vmem_to_smem (!%p1952_p6), %s268_s17, 16, %s1863_s12, [#allocation5]  }
  0x63   : > { %s2046_s19 = sadd.s32 1, %s1854_s27   ;;  %s33_s14 = sadd.s32 1, %s1850_s26 }
  0x64   : > { %s30_s11 = ssub.s32 %s1854_s27, %s2046_s19  ;;  %p40_p5 = scmp.ne.s32.totalorder %s1850_s26, %s1846_s25 }
  0x65   : > { %p31_p8 = scmp.eq.s32.totalorder %s30_s11, 0  ;;  %p41_p7 = scmp.eq.s32.totalorder %s1854_s27, 0 }
  0x66   : > { %p46_p9 = scmp.ne.s32.totalorder %s1846_s25, %s1842_s24  ;;  %p2293_p10 = scmp.eq.s32.totalorder %s1936_s30, 0 }
  0x67   : > { %s2057_s15 = scalar_select %p31_p8, %s1850_s26, %s33_s14  }
  0x68   : > { %p2059_p4 = por %p41_p7, %p40_p5  ;;  %p2065_p6 = por %p2293_p10, %p46_p9 }
  0x69   : > { %p196_p11 = scmp.eq.s32.totalorder %s1936_s30, 1  ;;  %p202_p12 = scmp.eq.s32.totalorder %s1180_s13, 1 }
  0x6a   : > { %p1586_p13 = scmp.lt.s32.totalorder %s1854_s27, 2  ;;  %s278_s18 = sand.u32 1, %s1850_s26  }
  0x6b   : > { %p2072_p0 = por %p196_p11, %p40_p5  ;;  %p2076_p2 = por %p202_p12, %p46_p9 }
  0x6c   : > { %s1187_s29 = sshll.u32 %s278_s18, 2  ;;  %s1188_s10 = sshll.u32 %s1854_s27, 6 }
  0x6d   : > { %s2295_s20 = scalar_select %p2072_p0, 1, 0 }
  0x6e   : > { %s2296_s21 = scalar_select %p2076_p2, 1, 0 }
  0x6f   : > { %s2084_s1 = scalar_lea.hbm %s2272_s0, %s1188_s10  ;;  %s282_s28 = scalar_lea.vmem [#allocation2], %s1187_s29 }
  0x70   : > { %s289_s9 = sshll.u32 %s282_s28, 4  ;;  %p2090_p1 = pnand %p1586_p13, %p2059_p4  ;;  %s2086_s9 = int_to_ptr.vmem [resolvable:$true] %s289_s9 }
  0x71   : > { %s279_s13 = scalar_lea.sflag [#allocation3], %s278_s18  ;;  %s1746_s11 = scalar_lea.hbm %s2084_s1, 64 }
  0x72   : > { %p1747_p3 = scmp.ne.s32.totalorder %s2084_s1, %s1746_s11  ;;  %p1748_p8 = pneg %p2090_p1 }
  0x73   : > { %s1751_s10 = scalar_lea.hbm %s2272_s0, 128  ;;  %p1752_p9 = scmp.lt.u32.totalorder %s2084_s1, %s2272_s0 }
  0x74   : > { %p1749_p5 = pnand %p1748_p8, %p1747_p3  ;;  %p1753_p4 = scmp.lt.u32.totalorder %s1751_s10, %s1746_s11 }
  0x75   : > { %p1755_p11 = scmp.lt.u32.totalorder %s1746_s11, %s2084_s1 }
  0x76   : > { %p1750_p7 = pneg %p1749_p5  ;;  %p1754_p10 = por %p1753_p4, %p1752_p9 }
  0x78   : > { %p1756_p12 = por %p1755_p11, %p1754_p10 }
  0x7a   : > { %p1757_p13 = pnand %p1756_p12, %p1750_p7 }
  0x7c   : > { %1760 = shalt.err (!%p1757_p13)
}
  0x7d   : > { %s1761_s18 = scalar_lea.vmem %s2086_s9, 64  ;;  %s1864_s22 = smov [#allocation2]  }
  0x7e   : > { %p1762_p3 = scmp.ne.s32.totalorder %s2086_s9, %s1761_s18  ;;  %s1766_s28 = sshll.u32 %s1864_s22, 4  ;;  %s1767_s28 = int_to_ptr.vmem [resolvable:$false] %s1766_s28 }
  0x7f   : > { %s1768_s14 = scalar_lea.vmem %s1767_s28, 128  ;;  %p1769_p0 = scmp.lt.s32.totalorder %s2086_s9, %s1767_s28 }
  0x80   : > { %p1764_p5 = pnand %p1762_p3, %p1748_p8  ;;  %p1770_p9 = scmp.lt.s32.totalorder %s1768_s14, %s1761_s18 }
  0x82   : > { %p1765_p2 = pneg %p1764_p5  ;;  %p1771_p4 = por %p1770_p9, %p1769_p0 }
  0x84   : > { %p1772_p10 = pnand %p1771_p4, %p1765_p2 }
  0x86   : > { %1775 = shalt.err (!%p1772_p10)
}
  0x87   : > { %1577 = dma.hbm_to_vmem [thread:$0]  (!%p2090_p1), %s2084_s1, 64, %s2086_s9, %s279_s13  }
  0x88   : > { %p2298_p7 = scmp.ne.s32.totalorder %s2286_s8, 0 }
  0x89   : > { %s2122_s11 = sand.u32 (!%p2298_p7), 1, %s1846_s25  }
  0x8a   : > { %298 = sbr.rel (%p2298_p7) target bundleno = 1295 (0x50f), region = 48  ;;  %s1190_s29 = sshll.u32 (!%p2298_p7), %s2122_s11, 2 }
  0x8b   : > { %s301_s10 = scalar_lea.sflag (!%p2298_p7), [#allocation3], %s2122_s11  ;;  %s304_s16 = scalar_lea.vmem (!%p2298_p7), [#allocation2], %s1190_s29 }
  0x91   : > { %1821 = dma.done.wait (%p2065_p6), %s301_s10, 64  }
  0x92   : > { %1823 = vsyncadd (%p2065_p6), %s301_s10, 4294967232  ;;  %p2299_p0 = scmp.eq.s32.totalorder %s1936_s30, 0 }
  0x94   : > { %1825 = dma.done.wait (%p2299_p0), [#allocation7], 2240   ;;  %p2300_p2 = pmov %p2299_p0 }
  0x95   : > { %p2301_p1 = pmov %p2299_p0 }
  0x96   : > { %1827 = vsyncadd (%p2300_p2), [#allocation7], 4294965056 }
  0x97   : > { %1829 = dma.done.wait (%p2301_p1), [#allocation10], 6144   ;;  %p2302_p8 = pmov %p2299_p0 }
  0x98   : > { %p2303_p11 = pmov %p2299_p0 }
  0x99   : > { %1831 = vsyncadd (%p2302_p8), [#allocation10], 4294961152 }
  0x9a   : > { %1833 = dma.done.wait (%p2303_p11), [#allocation5], 16   ;;  %p2304_p12 = pmov %p2299_p0 }
  0x9c   : > { %1835 = vsyncadd (%p2304_p12), [#allocation5], 4294967280 }
  0x9d   : > { %325 = sfence }
  0x9e   : > { %v2144_v0 = vld [vmem:[%s304_s16] sm:$0xf]  ;;  %vm366_vm0 = vcmask 1043456   ;;  %vm362_vm1 = vcmask 31744   ;;  %v1865_v1 = vmov 0.0   ;;  %vm1866_vm2 = vmmov 0  }
  0x9f   : > { %1285 = vmatprep.subr.mxu1 %v1865_v1  ;;  %1287 = vmatprep.mubr.msk.f32.mxu1 %vm1866_vm2, %v1865_v1  ;;  %v356_v2 = vld [vmem:[%s2274_s2] sm:$0xf]  ;;  %v1867_v4 = vmov 0   ;;  %v440_v5 = vld [vmem:[#allocation6] sm:$0xff]  ;;  %v441_v6 = vld [vmem:[#allocation6 + $0x8] sm:$0xff]  ;;  %v1868_v10 = vmov 0.0|0.0  }
  0xa0   : > { %v2155_v3 = vld [vmem:[%s2277_s5] sm:$0xf]  ;;  %1286 = vmatpush3.msk.msra.mxu1 %vm366_vm0, %v2144_v0  ;;  %1641 = vset.pattern.permute.xlu0 %v1867_v4  ;;  %v442_v7 = vld [vmem:[#allocation6 + $0x10] sm:$0xff]  ;;  %v1446_v8 = vpack.c.bf16 %v441_v6, %v440_v5  ;;  %v444_v12 = vld [vmem:[#allocation6 + $0x20] sm:$0xff]  ;;  %v1869_v32 = vmov 1   ;;  %v1870_v33 = vmov 2  }
  0xa1   : > { %1288 = vmatmul.mubr.msk.f32.vlgmr.msra.gmra.mrb[0].mxu1 %vm362_vm1, %v356_v2  ;;  %359 = vperm.xlu0 %1641, %v2155_v3   ;;  %v443_v9 = vld [vmem:[#allocation6 + $0x18] sm:$0xff]  ;;  %v445_v13 = vld [vmem:[#allocation6 + $0x28] sm:$0xff]  ;;  %v446_v15 = vld [vmem:[#allocation6 + $0x30] sm:$0xff]  ;;  %s354_s12 = sld [smem:[#allocation11]]  ;;  %s1196_s13 = sld [smem:[#allocation11 + $0x1]] }
  0xa2   : > { %1445 = vmatprep.subr.bf16.mxu1 %v1868_v10  ;;  %1322 = vmatprep.mubr.msk.f32.mxu1 %vm1866_vm2, %v1865_v1  ;;  %v1449_v11 = vpack.c.bf16 %v443_v9, %v442_v7  ;;  %v1452_v14 = vpack.c.bf16 %v445_v13, %v444_v12  ;;  %v447_v16 = vld [vmem:[#allocation6 + $0x38] sm:$0xff]  ;;  %v448_v18 = vld [vmem:[#allocation6 + $0x40] sm:$0xff]  ;;  %v449_v19 = vld [vmem:[#allocation6 + $0x48] sm:$0xff]  ;;  %s1206_s23 = sshll.u32 %s1936_s30, 6  ;;  %s351_s18 = scalar_lea.vmem [#allocation12], %s1190_s29 }
  0xa3   : > { %1447 = vmatpush3.bf16.msra.mxu1 %v1446_v8  ;;  %1469 = vmatprep.subr.bf16.mxu0 %v1868_v10  ;;  %v1455_v17 = vpack.c.bf16 %v447_v16, %v446_v15  ;;  %v1458_v20 = vpack.c.bf16 %v449_v19, %v448_v18  ;;  %v450_v21 = vld [vmem:[#allocation6 + $0x50] sm:$0xff]  ;;  %v451_v22 = vld [vmem:[#allocation6 + $0x58] sm:$0xff]  ;;  %v452_v24 = vld [vmem:[#allocation6 + $0x60] sm:$0xff]  ;;  %s1069_s22 = sshll.u32 %s351_s18, 4  ;;  %s2228_s10 = scalar_lea.hbm %s2279_s7, %s1206_s23  ;;  %s2230_s22 = int_to_ptr.vmem [resolvable:$true] %s1069_s22 }
  0xa4   : > { %1448 = vmatprep.subr.bf16.mxu1 %v1868_v10  ;;  %1357 = vmatprep.mubr.msk.f32.mxu0 %vm1866_vm2, %v1865_v1  ;;  %v1461_v23 = vpack.c.bf16 %v451_v22, %v450_v21  ;;  %v453_v25 = vld [vmem:[#allocation6 + $0x68] sm:$0xff]  ;;  %v454_v27 = vld [vmem:[#allocation6 + $0x70] sm:$0xff]  ;;  %v455_v28 = vld [vmem:[#allocation6 + $0x78] sm:$0xff]  ;;  %s1056_s16 = scalar_lea.sflag [#allocation4], %s2122_s11  ;;  %s1776_s8 = scalar_lea.vmem %s2230_s22, 64 }
  0xa5   : > { %v1464_v26 = vpack.c.bf16 %v453_v25, %v452_v24  ;;  %v1467_v29 = vpack.c.bf16 %v455_v28, %v454_v27  ;;  %v540_v30 = vld [vmem:[#allocation9] sm:$0xff]  ;;  %v541_v31 = vld [vmem:[#allocation9 + $0x8] sm:$0xff]  ;;  %1642 = vset.pattern.permute.xlu0 %v1869_v32  ;;  %1643 = vset.pattern.permute.xlu1 %v1870_v33  ;;  %v542_v35 = vld [vmem:[#allocation9 + $0x10] sm:$0xff]  ;;  %p1777_p6 = scmp.ne.s32.totalorder %s2230_s22, %s1776_s8  ;;  %p2305_p13 = scmp.ne.s32.totalorder %s2295_s20, 0 }
  0xa6   : > { %v1470_v34 = vpack.c.bf16 %v541_v31, %v540_v30  ;;  %527 = vperm.xlu0 %1642, %v2155_v3   ;;  %532 = vperm.xlu1 %1643, %v2155_v3   ;;  %v543_v36 = vld [vmem:[#allocation9 + $0x18] sm:$0xff]  ;;  %v544_v38 = vld [vmem:[#allocation9 + $0x20] sm:$0xff]  ;;  %v545_v39 = vld [vmem:[#allocation9 + $0x28] sm:$0xff]  ;;  %s1874_s30 = smov [#allocation12]  }
  0xa7   : > { %1450 = vmatpush3.bf16.msra.mxu1 %v1449_v11  ;;  %v1473_v37 = vpack.c.bf16 %v543_v36, %v542_v35  ;;  %v1476_v40 = vpack.c.bf16 %v545_v39, %v544_v38  ;;  %v546_v41 = vld [vmem:[#allocation9 + $0x30] sm:$0xff]  ;;  %v547_v42 = vld [vmem:[#allocation9 + $0x38] sm:$0xff]  ;;  %v548_v44 = vld [vmem:[#allocation9 + $0x40] sm:$0xff]  ;;  %p1778_p3 = pnand %p1777_p6, %p2305_p13  ;;  %s1780_s29 = sshll.u32 %s1874_s30, 4  ;;  %s1781_s29 = int_to_ptr.vmem [resolvable:$false] %s1780_s29 }
  0xa8   : > { %1451 = vmatprep.subr.bf16.mxu1 %v1868_v10  ;;  %1471 = vmatpush3.bf16.msra.mxu0 %v1470_v34  ;;  %v1479_v43 = vpack.c.bf16 %v547_v42, %v546_v41  ;;  %v549_v45 = vld [vmem:[#allocation9 + $0x48] sm:$0xff]  ;;  %v550_v47 = vld [vmem:[#allocation9 + $0x50] sm:$0xff]  ;;  %v551_v48 = vld [vmem:[#allocation9 + $0x58] sm:$0xff]  ;;  %s1782_s17 = scalar_lea.vmem %s1781_s29, 128  ;;  %p1783_p9 = scmp.lt.s32.totalorder %s2230_s22, %s1781_s29 }
  0xa9   : > { %1472 = vmatprep.subr.bf16.mxu0 %v1868_v10  ;;  %v1482_v46 = vpack.c.bf16 %v549_v45, %v548_v44  ;;  %v1485_v49 = vpack.c.bf16 %v551_v48, %v550_v47  ;;  %v628_v50 = vld [vmem:[#allocation9 + $0x80] sm:$0xff]  ;;  %v629_v51 = vld [vmem:[#allocation9 + $0x88] sm:$0xff]  ;;  %v630_v57 = vld [vmem:[#allocation9 + $0x90] sm:$0xff]  ;;  %p1779_p5 = pneg %p1778_p3  ;;  %p1784_p4 = scmp.lt.s32.totalorder %s1782_s17, %s1776_s8 }
  0xaa   : > { %v1494_v54 = vpack.c.bf16 %v629_v51, %v628_v50  ;;  %v631_v58 = vld [vmem:[#allocation9 + $0x98] sm:$0xff]  ;;  %v632_v60 = vld [vmem:[#allocation9 + $0xa0] sm:$0xff]  ;;  %v633_v61 = vld [vmem:[#allocation9 + $0xa8] sm:$0xff] }
  0xab   : > { %1453 = vmatpush3.bf16.msra.mxu1 %v1452_v14  ;;  %v1497_v59 = vpack.c.bf16 %v631_v58, %v630_v57  ;;  %v1500_v62 = vpack.c.bf16 %v633_v61, %v632_v60  ;;  %v634_v63 = vld [vmem:[#allocation9 + $0xb0] sm:$0xff]  ;;  %v635_v2 = vld [vmem:[#allocation9 + $0xb8] sm:$0xff]  ;;  %v636_v5 = vld [vmem:[#allocation9 + $0xc0] sm:$0xff]  ;;  %p1785_p10 = por %p1784_p4, %p1783_p9 }
  0xac   : > { %1454 = vmatprep.subr.bf16.mxu1 %v1868_v10  ;;  %1474 = vmatpush3.bf16.msra.mxu0 %v1473_v37  ;;  %v1503_v4 = vpack.c.bf16 %v635_v2, %v634_v63  ;;  %v637_v6 = vld [vmem:[#allocation9 + $0xc8] sm:$0xff]  ;;  %v638_v8 = vld [vmem:[#allocation9 + $0xd0] sm:$0xff]  ;;  %v639_v9 = vld [vmem:[#allocation9 + $0xd8] sm:$0xff]  ;;  %v1872_v63 = vmov 5   ;;  %v1873_v2 = vmov 4  }
  0xad   : > { %1475 = vmatprep.subr.bf16.mxu0 %v1868_v10  ;;  %v1506_v7 = vpack.c.bf16 %v637_v6, %v636_v5  ;;  %v1509_v11 = vpack.c.bf16 %v639_v9, %v638_v8  ;;  %v552_v12 = vld [vmem:[#allocation9 + $0x60] sm:$0xff]  ;;  %v553_v13 = vld [vmem:[#allocation9 + $0x68] sm:$0xff]  ;;  %v554_v18 = vld [vmem:[#allocation9 + $0x70] sm:$0xff]  ;;  %1646 = vset.pattern.permute.xlu0 %v1872_v63  ;;  %p1786_p7 = pnand %p1785_p10, %p1779_p5 }
  0xae   : > { %v640_v14 = vld [vmem:[#allocation9 + $0xe0] sm:$0xff]  ;;  %v1488_v15 = vpack.c.bf16 %v553_v13, %v552_v12  ;;  %v641_v16 = vld [vmem:[#allocation9 + $0xe8] sm:$0xff]  ;;  %v555_v19 = vld [vmem:[#allocation9 + $0x78] sm:$0xff]  ;;  %1045 = vperm.xlu0 %1646, %v2155_v3  }
  0xaf   : > { %1456 = vmatpush3.bf16.msra.mxu1 %v1455_v17  ;;  %v1512_v17 = vpack.c.bf16 %v641_v16, %v640_v14  ;;  %v1491_v21 = vpack.c.bf16 %v555_v19, %v554_v18  ;;  %v643_v22 = vld [vmem:[#allocation9 + $0xf8] sm:$0xff]  ;;  %v869_v36 = vld [vmem:[#allocation9 + $0x100] sm:$0xff]  ;;  %v870_v37 = vld [vmem:[#allocation9 + $0x108] sm:$0xff] }
  0xb0   : > { %1457 = vmatprep.subr.bf16.mxu1 %v1868_v10  ;;  %1477 = vmatpush3.bf16.msra.mxu0 %v1476_v40  ;;  %v715_v33 = vld [vmem:[#allocation8 + $0x4] sm:$0xf]  ;;  %v626_v40 = vld [vmem:[#allocation8] sm:$0xf]  ;;  %v1518_v41 = vpack.c.bf16 %v870_v37, %v869_v36  ;;  %v873_v45 = vld [vmem:[#allocation9 + $0x120] sm:$0xff] }
  0xb1   : > { %1478 = vmatprep.subr.bf16.mxu0 %v1868_v10  ;;  %v871_v42 = vld [vmem:[#allocation9 + $0x110] sm:$0xff]  ;;  %v877_v51 = vld [vmem:[#allocation9 + $0x140] sm:$0xff]  ;;  %v882_v57 = vld [vmem:[#allocation9 + $0x168] sm:$0xff] }
  0xb2   : > { %v875_v48 = vld [vmem:[#allocation9 + $0x130] sm:$0xff]  ;;  %v884_v60 = vld [vmem:[#allocation9 + $0x178] sm:$0xff] }
  0xb3   : > { %1459 = vmatpush3.bf16.msra.mxu1 %v1458_v20  ;;  %v642_v20 = vld [vmem:[#allocation9 + $0xf0] sm:$0xff] }
  0xb4   : > { %1460 = vmatprep.subr.bf16.mxu1 %v1868_v10  ;;  %1480 = vmatpush3.bf16.msra.mxu0 %v1479_v43  ;;  %v872_v43 = vld [vmem:[#allocation9 + $0x118] sm:$0xff] }
  0xb5   : > { %1481 = vmatprep.subr.bf16.mxu0 %v1868_v10  ;;  %v1521_v44 = vpack.c.bf16 %v872_v43, %v871_v42 }
  0xb7   : > { %1462 = vmatpush3.bf16.msra.mxu1 %v1461_v23  ;;  %v1515_v23 = vpack.c.bf16 %v643_v22, %v642_v20  ;;  %v1051_v20 = vstv %s1196_s13 }
  0xb8   : > { %1463 = vmatprep.subr.bf16.mxu1 %v1868_v10  ;;  %1483 = vmatpush3.bf16.msra.mxu0 %v1482_v46  ;;  %v874_v46 = vld [vmem:[#allocation9 + $0x128] sm:$0xff] }
  0xb9   : > { %1484 = vmatprep.subr.bf16.mxu0 %v1868_v10  ;;  %v1524_v47 = vpack.c.bf16 %v874_v46, %v873_v45 }
  0xbb   : > { %1465 = vmatpush3.bf16.msra.mxu1 %v1464_v26 }
  0xbc   : > { %1466 = vmatprep.subr.bf16.mxu1 %v1868_v10  ;;  %1486 = vmatpush3.bf16.msra.mxu0 %v1485_v49  ;;  %v876_v49 = vld [vmem:[#allocation9 + $0x138] sm:$0xff] }
  0xbd   : > { %1487 = vmatprep.subr.bf16.mxu0 %v1868_v10  ;;  %v1527_v50 = vpack.c.bf16 %v876_v49, %v875_v48 }
  0xbf   : > { %1468 = vmatpush3.bf16.msra.mxu1 %v1467_v29  ;;  %v537_v29 = vstv %s354_s12 }
  0xc0   : > { %1493 = vmatprep.subr.bf16.mxu1 %v1868_v10  ;;  %1489 = vmatpush3.bf16.msra.mxu0 %v1488_v15 }
  0xc1   : > { %1490 = vmatprep.subr.bf16.mxu0 %v1868_v10 }
  0xc4   : > { %1492 = vmatpush3.bf16.msra.mxu0 %v1491_v21 }
  0xc5   : > { %1395 = vmatprep.subr.mxu0 %v1865_v1 }
 0x120   : > { %v360_v52 = vpop.permute.xlu0 %359 }
 0x125   : > { %v528_v24 = vpop.permute.xlu0 %527  ;;  %v533_v26 = vpop.permute.xlu1 %532 }
 0x174   : > { %v436_v53 = vpop.f32.mrb[0].mxu1 }
 0x175   : > { %v437_v55 = vadd.f32 %v436_v53, %v360_v52  ;;  %v1289_v56 = vpop.f32.mrb[1].mxu1  ;;  %v878_v52 = vld [vmem:[#allocation9 + $0x148] sm:$0xff] }
 0x176   : > { %v1530_v53 = vpack.c.bf16 %v878_v52, %v877_v51  ;;  %v881_v56 = vld [vmem:[#allocation9 + $0x160] sm:$0xff] }
 0x177   : > { %1323 = vmatmul.mubr.f32.vlgmr.msra.gmra.mrb[2].mxu1 %v437_v55  ;;  %v1536_v58 = vpack.c.bf16 %v882_v57, %v881_v56 }
 0x178   : > { %1495 = vmatpush3.bf16.msra.mxu1 %v1494_v54  ;;  %1392 = vmatprep.mubr.msk.f32.mxu1 %vm1866_vm2, %v1865_v1  ;;  %v880_v54 = vld [vmem:[#allocation9 + $0x158] sm:$0xff] }
 0x179   : > { %1496 = vmatprep.subr.bf16.mxu1 %v1868_v10 }
 0x17c   : > { %1498 = vmatpush3.bf16.msra.mxu1 %v1497_v59  ;;  %v883_v59 = vld [vmem:[#allocation9 + $0x170] sm:$0xff] }
 0x17d   : > { %1499 = vmatprep.subr.bf16.mxu1 %v1868_v10  ;;  %v1539_v61 = vpack.c.bf16 %v884_v60, %v883_v59 }
 0x180   : > { %1501 = vmatpush3.bf16.msra.mxu1 %v1500_v62  ;;  %v1871_v62 = vmov 3  }
 0x181   : > { %1502 = vmatprep.subr.bf16.mxu1 %v1868_v10  ;;  %1644 = vset.pattern.permute.xlu1 %v1871_v62 }
 0x182   : > { %1035 = vperm.xlu1 %1644, %v2155_v3  }
 0x184   : > { %1504 = vmatpush3.bf16.msra.mxu1 %v1503_v4 }
 0x185   : > { %1505 = vmatprep.subr.bf16.mxu1 %v1868_v10 }
 0x186   : > { %1645 = vset.pattern.permute.xlu1 %v1873_v2 }
 0x187   : > { %1040 = vperm.xlu1 %1645, %v2155_v3  }
 0x188   : > { %1507 = vmatpush3.bf16.msra.mxu1 %v1506_v7 }
 0x189   : > { %1508 = vmatprep.subr.bf16.mxu1 %v1868_v10 }
 0x18c   : > { %1510 = vmatpush3.bf16.msra.mxu1 %v1509_v11 }
 0x18d   : > { %1511 = vmatprep.subr.bf16.mxu1 %v1868_v10 }
 0x190   : > { %1513 = vmatpush3.bf16.msra.mxu1 %v1512_v17  ;;  %v1046_v17 = vpop.permute.xlu0 %1045 }
 0x191   : > { %1514 = vmatprep.subr.bf16.mxu1 %v1868_v10 }
 0x194   : > { %1516 = vmatpush3.bf16.msra.mxu1 %v1515_v23 }
 0x195   : > { %1440 = vmatprep.subr.mxu1 %v1865_v1 }
 0x201   : > { %v1036_v12 = vpop.permute.xlu1 %1035 }
 0x206   : > { %v1041_v3 = vpop.permute.xlu1 %1040 }
 0x24a   : > { %v522_v25 = vpop.f32.mrb[2].mxu1 }
 0x24b   : > { %v530_v27 = vmul.f32 %v528_v24, %v522_v25  ;;  %v1324_v28 = vpop.f32.mrb[3].mxu1 }
 0x24d   : > { %v535_v30 = vadd.f32 %v533_v26, %v530_v27 }
 0x24f   : > { %v538_v31 = vmul.f32 %v537_v29, %v535_v30  ;;  %vm536_vm3 = vcmp.gt.f32.partialorder %v535_v30, 0.0 }
 0x251   : > { %v539_v32 = vsel %vm536_vm3, %v535_v30, %v538_v31 }
 0x252   : > { %1358 = vmatmul.mubr.f32.vlgmr.msra.gmra.mrb[0].mxu0 %v539_v32  ;;  %1393 = vmatmul.mubr.f32.vlgmr.msra.gmra.mrb[4].mxu1 %v539_v32 }
 0x253   : > { %1397 = vmatprep.mubr.msk.f32.mxu0 %vm1866_vm2, %v1865_v1  ;;  %1442 = vmatprep.mubr.msk.f32.mxu1 %vm1866_vm2, %v1865_v1 }
 0x325   : > { %v622_v34 = vpop.f32.mrb[0].mxu0  ;;  %v710_v35 = vpop.f32.mrb[4].mxu1 }
 0x326   : > { %v1359_v38 = vpop.f32.mrb[1].mxu0  ;;  %v1394_v39 = vpop.f32.mrb[5].mxu1  ;;  %1396 = vmatpush3.msk.msra.mxu0 %vm366_vm0, %v710_v35 }
 0x327   : > { %1398 = vmatmul.mubr.msk.f32.vlgmr.msra.gmra.mrb[2].mxu0 %vm362_vm1, %v715_v33  ;;  %1400 = vmatprep.subr.mxu0 %v1865_v1 }
 0x328   : > { %1401 = vmatpush3.msk.msra.mxu0 %vm366_vm0, %v622_v34  ;;  %1402 = vmatprep.mubr.msk.f32.mxu0 %vm1866_vm2, %v1865_v1 }
 0x329   : > { %1517 = vmatprep.subr.bf16.mxu0 %v1868_v10 }
 0x32b   : > { %1403 = vmatmul.mubr.msk.f32.vlgmr.msra.gmra.mrb[4].mxu0 %vm362_vm1, %v626_v40 }
 0x32c   : > { %1519 = vmatpush3.bf16.msra.mxu0 %v1518_v41  ;;  %1437 = vmatprep.mubr.msk.f32.mxu0 %vm1866_vm2, %v1865_v1  ;;  %v879_v1 = vld [vmem:[#allocation9 + $0x150] sm:$0xff] }
 0x32d   : > { %1520 = vmatprep.subr.bf16.mxu0 %v1868_v10  ;;  %v1533_v55 = vpack.c.bf16 %v880_v54, %v879_v1 }
 0x330   : > { %1522 = vmatpush3.bf16.msra.mxu0 %v1521_v44 }
 0x331   : > { %1523 = vmatprep.subr.bf16.mxu0 %v1868_v10 }
 0x334   : > { %1525 = vmatpush3.bf16.msra.mxu0 %v1524_v47 }
 0x335   : > { %1526 = vmatprep.subr.bf16.mxu0 %v1868_v10 }
 0x338   : > { %1528 = vmatpush3.bf16.msra.mxu0 %v1527_v50 }
 0x339   : > { %1529 = vmatprep.subr.bf16.mxu0 %v1868_v10 }
 0x33c   : > { %1531 = vmatpush3.bf16.msra.mxu0 %v1530_v53 }
 0x33d   : > { %1532 = vmatprep.subr.bf16.mxu0 %v1868_v10 }
 0x340   : > { %1534 = vmatpush3.bf16.msra.mxu0 %v1533_v55 }
 0x341   : > { %1535 = vmatprep.subr.bf16.mxu0 %v1868_v10 }
 0x344   : > { %1537 = vmatpush3.bf16.msra.mxu0 %v1536_v58 }
 0x345   : > { %1538 = vmatprep.subr.bf16.mxu0 %v1868_v10  ;;  %v956_v10 = vld [vmem:[#allocation8 + $0x8] sm:$0xf] }
 0x348   : > { %1540 = vmatpush3.bf16.msra.mxu0 %v1539_v61 }
 0x34b   : > { %1438 = vmatmul.mubr.f32.vlgmr.msra.gmra.mrb[6].mxu0 %v539_v32 }
 0x3fa   : > { %v788_v4 = vpop.f32.mrb[2].mxu0 }
 0x3fb   : > { %v1399_v5 = vpop.f32.mrb[3].mxu0 }
 0x3fe   : > { %v864_v6 = vpop.f32.mrb[4].mxu0 }
 0x3ff   : > { %v865_v7 = vadd.f32 %v864_v6, %v788_v4  ;;  %v1404_v8 = vpop.f32.mrb[5].mxu0 }
 0x41e   : > { %v951_v9 = vpop.f32.mrb[6].mxu0 }
 0x41f   : > { %v1439_v11 = vpop.f32.mrb[7].mxu0  ;;  %1441 = vmatpush3.msk.msra.mxu1 %vm366_vm0, %v951_v9 }
 0x420   : > { %1443 = vmatmul.mubr.msk.f32.vlgmr.msra.gmra.mrb[6].mxu1 %vm362_vm1, %v956_v10 }
 0x4f3   : > { %v1029_v13 = vpop.f32.mrb[6].mxu1 }
 0x4f4   : > { %v1033_v14 = vadd.f32 %v1029_v13, %v865_v7  ;;  %v1444_v15 = vpop.f32.mrb[7].mxu1 }
 0x4f6   : > { %v1038_v16 = vadd.f32 %v1036_v12, %v1033_v14 }
 0x4f8   : > { %v1043_v18 = vmul.f32 %v1041_v3, %v1038_v16 }
 0x4fa   : > { %v1048_v19 = vadd.f32 %v1046_v17, %v1043_v18 }
 0x4fc   : > { %v1049_v21 = vadd.f32 %v1048_v19, %v2144_v0 }
 0x4fe   : > { %v1052_v22 = vmul.f32 %v1051_v20, %v1049_v21  ;;  %vm1050_vm4 = vcmp.gt.f32.partialorder %v1049_v21, 0.0 }
 0x500   : > { %v1053_v23 = vsel %vm1050_vm4, %v1049_v21, %v1052_v22 }
 0x501   : > { %1054 = vst [vmem:[%s351_s18] sm:$0xf] %v1053_v23 }
 0x502   : > { %1789 = shalt.err (!%p1786_p7)
}
 0x503   : > { %s1790_s11 = scalar_lea.hbm %s2228_s10, 64  ;;  %s1794_s12 = scalar_lea.hbm %s2279_s7, 128 }
 0x504   : > { %p1791_p0 = scmp.ne.s32.totalorder %s2228_s10, %s1790_s11  ;;  %p1795_p8 = scmp.lt.u32.totalorder %s2228_s10, %s2279_s7 }
 0x505   : > { %p1796_p11 = scmp.lt.u32.totalorder %s1794_s12, %s1790_s11  ;;  %p1798_p6 = scmp.lt.u32.totalorder %s1790_s11, %s2228_s10 }
 0x506   : > { %p1792_p2 = pnand %p1791_p0, %p2305_p13 }
 0x507   : > { %p1797_p12 = por %p1796_p11, %p1795_p8 }
 0x508   : > { %p1793_p1 = pneg %p1792_p2 }
 0x509   : > { %p1799_p3 = por %p1798_p6, %p1797_p12 }
 0x50b   : > { %p1800_p5 = pnand %p1799_p3, %p1793_p1 }
 0x50d   : > { %1803 = shalt.err (!%p1800_p5)
}
 0x50e   : > { %1559 = dma.vmem_to_hbm [thread:$0]  (%p2305_p13), %s2230_s22, 64, %s2228_s10, %s1056_s16  }
 0x50f PF: > { %s1081_s18 = sand.u32 1, %s1842_s24   ;;  %p2306_p9 = scmp.ne.s32.totalorder %s2296_s21, 0 }
 0x510   : > { %p2307_p4 = scmp.ge.s32.totalorder %s1854_s27, 2  ;;  %s1082_s28 = scalar_lea.sflag [#allocation4], %s1081_s18 }
 0x512   : > { %p1579_p10 = pnand %p2307_p4, %p2306_p9 }
 0x514   : > { %1837 = dma.done.wait (!%p1579_p10), %s1082_s28, 64  }
 0x515   : > { %1839 = vsyncadd (!%p1579_p10), %s1082_s28, 4294967232  ;;  %p23_p7 = scmp.ge.s32.totalorder %s2046_s19, 4   ;;  %s2308_s24 = smov %s1846_s25 }
 0x516   : > { %s2309_s25 = smov %s1850_s26  ;;  %s2310_s26 = smov %s2057_s15 }
 0x517   : > { %s2311_s27 = smov %s2046_s19  ;;  %25 = sbr.rel (!%p23_p7) target bundleno = 10 (0xa), region = 114 }
 0x51e   :  { %1087 = vsyncpa [#allocation3], 1 }
 0x51f   :  { %1089 = vsyncpa [#allocation3 + $0x1], 1 }
 0x520   :  { %1090 = vsyncpa [#allocation7], 1 }
 0x521   :  { %1091 = vsyncpa [#allocation10], 1 }
 0x522   :  { %1092 = vsyncpa [#allocation4], 1 }
 0x523   :  { %1094 = vsyncpa [#allocation4 + $0x1], 1 }
 0x524   :  { %1095 = vsyncpa [#allocation5], 1 }
 0x525   :  { %1097 = vsyncpa [#allocation5 + $0x1], 1 }

</bundles_post_ra>
